<compile_context>
chip_gen: v7x
topology: tpu7x:2x2x1
jax: 0.10.0
libtpu: 0.0.40
codegen_flags: <defaults>
</compile_context>

<pallas_src>
import jax
import jax.numpy as jnp
from jax.experimental import pallas as pl
from jax.experimental.pallas import tpu as pltpu

EPS = 1e-5


def conv_stats_kernel(x_ref, sel_ref, w_ref, y_ref, s_ref, ss_ref):
    """Per-image: ReLU -> stride-2 subsample (0/1 selection matmul) ->
    fused [conv_1 ; conv_2] 1x1 conv -> per-image per-channel BN partial stats.

    x_ref:   (Cin, H*W)   one NCHW image: channels on sublanes, pixels on lanes
    sel_ref: (H*W, Po)    0/1 pixel-selection matrix (resident across the grid)
    w_ref:   (Cout, Cin)  fused conv weight, rows = [conv_1 ; conv_2]
    y_ref:   (Cout, Po)   pre-BN activations (already NCHW-compatible layout)
    s_ref:   (Cout, 1)    per-image per-channel sum of y
    ss_ref:  (Cout, 1)    per-image per-channel sum of y*y
    """
    x = jnp.maximum(x_ref[...], 0.0)                                        # ReLU
    # Spatial stride-2 subsample as a matmul (MXU has huge slack here).
    x_sub = jnp.dot(x, sel_ref[...], preferred_element_type=jnp.float32)    # (Cin, Po)
    # Fused conv_1 + conv_2 (both 1x1): single (Cout,Cin) x (Cin,Po) matmul.
    y = jnp.dot(w_ref[...], x_sub, preferred_element_type=jnp.float32)      # (Cout, Po)
    y_ref[...] = y
    s_ref[...] = jnp.sum(y, axis=1, keepdims=True)
    ss_ref[...] = jnp.sum(y * y, axis=1, keepdims=True)


def bn_apply_kernel(y_ref, scale_ref, bias_ref, o_ref):
    """Per-image BatchNorm application with pre-folded per-channel scale/bias."""
    o_ref[...] = y_ref[...] * scale_ref[...] + bias_ref[...]


def customnet_forward(x_nchw, w1, w2, gamma, beta):
    """x_nchw: (N, 64, H, W) f32.  w1/w2: (32, 64, 1, 1).  gamma/beta: (64,)."""
    N, Cin, H, W = x_nchw.shape
    C1, C2 = w1.shape[0], w2.shape[0]
    Cout = C1 + C2
    stride = 2
    # stride-2, pad-0, k=1 conv output size = floor((dim-1)/2) + 1.
    Ho = (H - 1) // stride + 1
    Wo = (W - 1) // stride + 1
    HW = H * W
    Po = Ho * Wo

    # Free (contiguous) reshape only -- the kernel consumes NCHW directly.
    x3 = x_nchw.reshape(N, Cin, HW)

    # Fuse the two 1x1-conv weights: rows [w1 ; w2] preserve
    # torch.cat([conv_1(x), conv_2(x)], dim=1) ordering.
    w_fused = jnp.concatenate([w1.reshape(C1, Cin), w2.reshape(C2, Cin)], axis=0)

    # 0/1 selection matrix implementing the stride-2 subsample as a matmul:
    # column (i*Wo + j) picks source pixel (2i, 2j).
    pix = jnp.arange(HW)
    ph, pw = pix // W, pix % W
    tgt = jnp.where((ph % stride == 0) & (pw % stride == 0),
                    (ph // stride) * Wo + (pw // stride), -1)
    sel = (tgt[:, None] == jnp.arange(Po)[None, :]).astype(jnp.float32)   # (HW, Po)
    # TODO(synk): for large H*W, replace the (HW, Po) selection matrix with
    # separable (H,Ho)/(W,Wo) selections or even-row strided DMA via the
    # BlockSpec index_map, and add a spatial tile axis (sized per
    # pltpu.get_tpu_info().vmem_capacity_bytes for v7x's smaller VMEM).

    # ---- Pass 1: relu + subsample + fused conv + per-image BN partial stats.
    flops1 = N * (2 * Cin * HW * Po + 2 * Cout * Cin * Po + Cin * HW + 3 * Cout * Po)
    bytes1 = 4 * (N * Cin * HW + HW * Po + Cout * Cin + N * Cout * Po + 2 * N * Cout)
    y3, s, ss = pl.pallas_call(
        conv_stats_kernel,
        out_shape=(
            jax.ShapeDtypeStruct((N, Cout, Po), jnp.float32),
            jax.ShapeDtypeStruct((N, Cout, 1), jnp.float32),
            jax.ShapeDtypeStruct((N, Cout, 1), jnp.float32),
        ),
        grid=(N,),
        in_specs=[
            pl.BlockSpec((None, Cin, HW), lambda n: (n, 0, 0)),
            pl.BlockSpec((HW, Po), lambda n: (0, 0)),       # resident
            pl.BlockSpec((Cout, Cin), lambda n: (0, 0)),    # resident
        ],
        out_specs=(
            pl.BlockSpec((None, Cout, Po), lambda n: (n, 0, 0)),
            pl.BlockSpec((None, Cout, 1), lambda n: (n, 0, 0)),
            pl.BlockSpec((None, Cout, 1), lambda n: (n, 0, 0)),
        ),
        compiler_params=pltpu.CompilerParams(dimension_semantics=("parallel",)),
        cost_estimate=pl.CostEstimate(
            flops=flops1, transcendentals=0, bytes_accessed=bytes1),
    )(x3, sel, w_fused)

    # Tiny (64-float) global BN statistics + scale/bias folding (training mode,
    # biased variance).  Negligible HBM traffic; stays in the XLA wrapper.
    count = N * Po
    mean = jnp.sum(s, axis=0) / count                     # (Cout, 1)
    var = jnp.sum(ss, axis=0) / count - mean * mean       # biased variance
    inv_std = jax.lax.rsqrt(var + EPS)
    scale = gamma.reshape(Cout, 1) * inv_std
    bias = beta.reshape(Cout, 1) - mean * scale

    # ---- Pass 2: apply BN per image (parallel over N for v7x's 2 TCs).
    flops2 = 2 * N * Cout * Po
    bytes2 = 4 * (2 * N * Cout * Po + 2 * Cout)
    out3 = pl.pallas_call(
        bn_apply_kernel,
        out_shape=jax.ShapeDtypeStruct((N, Cout, Po), jnp.float32),
        grid=(N,),
        in_specs=[
            pl.BlockSpec((None, Cout, Po), lambda n: (n, 0, 0)),
            pl.BlockSpec((Cout, 1), lambda n: (0, 0)),      # resident
            pl.BlockSpec((Cout, 1), lambda n: (0, 0)),      # resident
        ],
        out_specs=pl.BlockSpec((None, Cout, Po), lambda n: (n, 0, 0)),
        compiler_params=pltpu.CompilerParams(dimension_semantics=("parallel",)),
        cost_estimate=pl.CostEstimate(
            flops=flops2, transcendentals=0, bytes_accessed=bytes2),
    )(y3, scale, bias)

    # Free (contiguous) reshape to NCHW output -- no transpose pass.
    return out3.reshape(N, Cout, Ho, Wo)


if __name__ == "__main__":
    key = jax.random.PRNGKey(0)
    kx, k1, k2, kg, kb = jax.random.split(key, 5)

    # Small shapes consistent with the module: Cin must be 64 (Conv2d(64, 32, 1)).
    N, Cin, H, W = 2, 64, 16, 16
    x = jax.random.normal(kx, (N, Cin, H, W), dtype=jnp.float32)

    w1 = jax.random.normal(k1, (32, Cin, 1, 1), dtype=jnp.float32) * 0.1
    w2 = jax.random.normal(k2, (32, Cin, 1, 1), dtype=jnp.float32) * 0.1
    gamma = 1.0 + 0.1 * jax.random.normal(kg, (64,), dtype=jnp.float32)
    beta = 0.1 * jax.random.normal(kb, (64,), dtype=jnp.float32)

    fwd = jax.jit(customnet_forward)
    out = fwd(x, w1, w2, gamma, beta)
    jax.block_until_ready(out)
    assert out.shape == (N, 64, H // 2, W // 2), out.shape
    print("KERNEL_OK")
</pallas_src>

<mosaic_0001>
module attributes {stable_mosaic.version = 11 : i64} {
  func.func @conv_stats_kernel(%arg0: i32, %arg1: memref<1x64x256xf32, #tpu.memory_space<vmem>>, %arg2: memref<256x64xf32, #tpu.memory_space<vmem>>, %arg3: memref<64x64xf32, #tpu.memory_space<vmem>>, %arg4: memref<1x64x64xf32, #tpu.memory_space<vmem>>, %arg5: memref<1x64x1xf32, #tpu.memory_space<vmem>>, %arg6: memref<1x64x1xf32, #tpu.memory_space<vmem>>) attributes {dimension_semantics = [#tpu.dimension_semantics<parallel>], iteration_bounds = array<i64: 2>, scalar_prefetch = 0 : i64, scratch_operands = 0 : i64, tpu.core_type = #tpu.core_type<tc>, window_params = [{transform_indices = @transform_0, window_bounds = array<i64: 1, 64, 256>}, {pipeline_mode = #tpu.pipeline_mode<synchronous>, transform_indices = @transform_1, window_bounds = array<i64: 256, 64>}, {pipeline_mode = #tpu.pipeline_mode<synchronous>, transform_indices = @transform_2, window_bounds = array<i64: 64, 64>}, {transform_indices = @transform_3, window_bounds = array<i64: 1, 64, 64>}, {transform_indices = @transform_4, window_bounds = array<i64: 1, 64, 1>}, {transform_indices = @transform_5, window_bounds = array<i64: 1, 64, 1>}]} {
    %c0 = arith.constant 0 : index
    %c0_0 = arith.constant 0 : index
    %c0_1 = arith.constant 0 : index
    %0 = vector.load %arg1[%c0, %c0_0, %c0_1] : memref<1x64x256xf32, #tpu.memory_space<vmem>>, vector<1x64x256xf32>
    %1 = vector.shape_cast %0 : vector<1x64x256xf32> to vector<64x256xf32>
    %cst = arith.constant 0.000000e+00 : f32
    %2 = vector.broadcast %cst : f32 to vector<64x256xf32>
    %3 = arith.maximumf %1, %2 : vector<64x256xf32>
    %c0_2 = arith.constant 0 : index
    %c0_3 = arith.constant 0 : index
    %4 = vector.load %arg2[%c0_2, %c0_3] : memref<256x64xf32, #tpu.memory_space<vmem>>, vector<256x64xf32>
    %cst_4 = arith.constant dense<0.000000e+00> : vector<64x64xf32>
    %5 = tpu.matmul %3, %4, %cst_4 {dimension_numbers = #tpu.dot_dimension_numbers<[1], [0], [0], [1], [0, 0, 1, 1], [], []>} : vector<64x256xf32>, vector<256x64xf32>, vector<64x64xf32> -> vector<64x64xf32>
    %c0_5 = arith.constant 0 : index
    %c0_6 = arith.constant 0 : index
    %6 = vector.load %arg3[%c0_5, %c0_6] : memref<64x64xf32, #tpu.memory_space<vmem>>, vector<64x64xf32>
    %cst_7 = arith.constant dense<0.000000e+00> : vector<64x64xf32>
    %7 = tpu.matmul %6, %5, %cst_7 {dimension_numbers = #tpu.dot_dimension_numbers<[1], [0], [0], [1], [0, 0, 1, 1], [], []>} : vector<64x64xf32>, vector<64x64xf32>, vector<64x64xf32> -> vector<64x64xf32>
    %c0_8 = arith.constant 0 : index
    %c0_9 = arith.constant 0 : index
    %c0_10 = arith.constant 0 : index
    %8 = vector.load %arg4[%c0_8, %c0_9, %c0_10] : memref<1x64x64xf32, #tpu.memory_space<vmem>>, vector<1x64x64xf32>
    %9 = vector.shape_cast %8 : vector<1x64x64xf32> to vector<64x64xf32>
    %10 = vector.shape_cast %7 : vector<64x64xf32> to vector<1x64x64xf32>
    tpu.vector_store %arg4[%c0_8, %c0_9, %c0_10], %10 {strides = array<i32>} : memref<1x64x64xf32, #tpu.memory_space<vmem>>, vector<1x64x64xf32>,
    %cst_11 = arith.constant dense<0.000000e+00> : vector<64xf32>
    %11 = vector.multi_reduction <add>, %7, %cst_11 [1] : vector<64x64xf32> to vector<64xf32>
    %12 = vector.shape_cast %11 : vector<64xf32> to vector<64x1xf32>
    %c0_12 = arith.constant 0 : index
    %c0_13 = arith.constant 0 : index
    %c0_14 = arith.constant 0 : index
    %13 = vector.load %arg5[%c0_12, %c0_13, %c0_14] : memref<1x64x1xf32, #tpu.memory_space<vmem>>, vector<1x64x1xf32>
    %14 = vector.shape_cast %13 : vector<1x64x1xf32> to vector<64x1xf32>
    %15 = vector.shape_cast %12 : vector<64x1xf32> to vector<1x64x1xf32>
    tpu.vector_store %arg5[%c0_12, %c0_13, %c0_14], %15 {strides = array<i32>} : memref<1x64x1xf32, #tpu.memory_space<vmem>>, vector<1x64x1xf32>,
    %16 = arith.mulf %7, %7 : vector<64x64xf32>
    %cst_15 = arith.constant dense<0.000000e+00> : vector<64xf32>
    %17 = vector.multi_reduction <add>, %16, %cst_15 [1] : vector<64x64xf32> to vector<64xf32>
    %18 = vector.shape_cast %17 : vector<64xf32> to vector<64x1xf32>
    %c0_16 = arith.constant 0 : index
    %c0_17 = arith.constant 0 : index
    %c0_18 = arith.constant 0 : index
    %19 = vector.load %arg6[%c0_16, %c0_17, %c0_18] : memref<1x64x1xf32, #tpu.memory_space<vmem>>, vector<1x64x1xf32>
    %20 = vector.shape_cast %19 : vector<1x64x1xf32> to vector<64x1xf32>
    %21 = vector.shape_cast %18 : vector<64x1xf32> to vector<1x64x1xf32>
    tpu.vector_store %arg6[%c0_16, %c0_17, %c0_18], %21 {strides = array<i32>} : memref<1x64x1xf32, #tpu.memory_space<vmem>>, vector<1x64x1xf32>,
    return
  }
  func.func @transform_0(%arg0: i32) -> (i32, i32, i32) {
    %c0_i32 = arith.constant 0 : i32
    %c0_i32_0 = arith.constant 0 : i32
    %c0_i32_1 = arith.constant 0 : i32
    return %arg0, %c0_i32, %c0_i32_0 : i32, i32, i32
  }
  func.func @transform_1(%arg0: i32) -> (i32, i32) {
    %c0_i32 = arith.constant 0 : i32
    %c0_i32_0 = arith.constant 0 : i32
    %c0_i32_1 = arith.constant 0 : i32
    return %c0_i32, %c0_i32_0 : i32, i32
  }
  func.func @transform_2(%arg0: i32) -> (i32, i32) {
    %c0_i32 = arith.constant 0 : i32
    %c0_i32_0 = arith.constant 0 : i32
    %c0_i32_1 = arith.constant 0 : i32
    return %c0_i32, %c0_i32_0 : i32, i32
  }
  func.func @transform_3(%arg0: i32) -> (i32, i32, i32) {
    %c0_i32 = arith.constant 0 : i32
    %c0_i32_0 = arith.constant 0 : i32
    %c0_i32_1 = arith.constant 0 : i32
    return %arg0, %c0_i32, %c0_i32_0 : i32, i32, i32
  }
  func.func @transform_4(%arg0: i32) -> (i32, i32, i32) {
    %c0_i32 = arith.constant 0 : i32
    %c0_i32_0 = arith.constant 0 : i32
    %c0_i32_1 = arith.constant 0 : i32
    return %arg0, %c0_i32, %c0_i32_0 : i32, i32, i32
  }
  func.func @transform_5(%arg0: i32) -> (i32, i32, i32) {
    %c0_i32 = arith.constant 0 : i32
    %c0_i32_0 = arith.constant 0 : i32
    %c0_i32_1 = arith.constant 0 : i32
    return %arg0, %c0_i32, %c0_i32_0 : i32, i32, i32
  }
}

module attributes {stable_mosaic.version = 11 : i64} {
  func.func @bn_apply_kernel(%arg0: i32, %arg1: memref<1x64x64xf32, #tpu.memory_space<vmem>>, %arg2: memref<64x1xf32, #tpu.memory_space<vmem>>, %arg3: memref<64x1xf32, #tpu.memory_space<vmem>>, %arg4: memref<1x64x64xf32, #tpu.memory_space<vmem>>) attributes {dimension_semantics = [#tpu.dimension_semantics<parallel>], iteration_bounds = array<i64: 2>, scalar_prefetch = 0 : i64, scratch_operands = 0 : i64, tpu.core_type = #tpu.core_type<tc>, window_params = [{transform_indices = @transform_0, window_bounds = array<i64: 1, 64, 64>}, {pipeline_mode = #tpu.pipeline_mode<synchronous>, transform_indices = @transform_1, window_bounds = array<i64: 64, 1>}, {pipeline_mode = #tpu.pipeline_mode<synchronous>, transform_indices = @transform_2, window_bounds = array<i64: 64, 1>}, {transform_indices = @transform_3, window_bounds = array<i64: 1, 64, 64>}]} {
    %c0 = arith.constant 0 : index
    %c0_0 = arith.constant 0 : index
    %c0_1 = arith.constant 0 : index
    %0 = vector.load %arg1[%c0, %c0_0, %c0_1] : memref<1x64x64xf32, #tpu.memory_space<vmem>>, vector<1x64x64xf32>
    %1 = vector.shape_cast %0 : vector<1x64x64xf32> to vector<64x64xf32>
    %c0_2 = arith.constant 0 : index
    %c0_3 = arith.constant 0 : index
    %2 = vector.load %arg2[%c0_2, %c0_3] : memref<64x1xf32, #tpu.memory_space<vmem>>, vector<64x1xf32>
    %3 = vector.broadcast %2 : vector<64x1xf32> to vector<64x64xf32>
    %4 = arith.mulf %1, %3 : vector<64x64xf32>
    %c0_4 = arith.constant 0 : index
    %c0_5 = arith.constant 0 : index
    %5 = vector.load %arg3[%c0_4, %c0_5] : memref<64x1xf32, #tpu.memory_space<vmem>>, vector<64x1xf32>
    %6 = vector.broadcast %5 : vector<64x1xf32> to vector<64x64xf32>
    %7 = arith.addf %4, %6 : vector<64x64xf32>
    %c0_6 = arith.constant 0 : index
    %c0_7 = arith.constant 0 : index
    %c0_8 = arith.constant 0 : index
    %8 = vector.load %arg4[%c0_6, %c0_7, %c0_8] : memref<1x64x64xf32, #tpu.memory_space<vmem>>, vector<1x64x64xf32>
    %9 = vector.shape_cast %8 : vector<1x64x64xf32> to vector<64x64xf32>
    %10 = vector.shape_cast %7 : vector<64x64xf32> to vector<1x64x64xf32>
    tpu.vector_store %arg4[%c0_6, %c0_7, %c0_8], %10 {strides = array<i32>} : memref<1x64x64xf32, #tpu.memory_space<vmem>>, vector<1x64x64xf32>,
    return
  }
  func.func @transform_0(%arg0: i32) -> (i32, i32, i32) {
    %c0_i32 = arith.constant 0 : i32
    %c0_i32_0 = arith.constant 0 : i32
    %c0_i32_1 = arith.constant 0 : i32
    return %arg0, %c0_i32, %c0_i32_0 : i32, i32, i32
  }
  func.func @transform_1(%arg0: i32) -> (i32, i32) {
    %c0_i32 = arith.constant 0 : i32
    %c0_i32_0 = arith.constant 0 : i32
    %c0_i32_1 = arith.constant 0 : i32
    return %c0_i32, %c0_i32_0 : i32, i32
  }
  func.func @transform_2(%arg0: i32) -> (i32, i32) {
    %c0_i32 = arith.constant 0 : i32
    %c0_i32_0 = arith.constant 0 : i32
    %c0_i32_1 = arith.constant 0 : i32
    return %c0_i32, %c0_i32_0 : i32, i32
  }
  func.func @transform_3(%arg0: i32) -> (i32, i32, i32) {
    %c0_i32 = arith.constant 0 : i32
    %c0_i32_0 = arith.constant 0 : i32
    %c0_i32_1 = arith.constant 0 : i32
    return %arg0, %c0_i32, %c0_i32_0 : i32, i32, i32
  }
}

</mosaic_0001>

<bundles_post_ra>
// kernel: customnet_forward.2
= control target key start
LH: loop header
LB: loop body
LE: loop exit
PB: predicated region body
PF: predicated region fallthrough
CT: control target
= control target key end

     0   :  { %s980_s18 = smov 0   ;;  %s1218_s0 = inlined_call_operand.vmem [shape: f32[2,64,256], index: 0, kind: input, shape index: {}]   ;;  %s1219_s1 = inlined_call_operand.vmem [shape: f32[256,64], index: 1, kind: input, shape index: {}]   ;;  %s1220_s2 = inlined_call_operand.vmem [shape: f32[64,64], index: 2, kind: input, shape index: {}]   ;;  %s1221_s3 = inlined_call_operand.vmem [shape: f32[2,64,64], index: 3, kind: output, shape index: {0}]   ;;  %s1222_s4 = inlined_call_operand.vmem [shape: f32[2,64,1], index: 4, kind: output, shape index: {1}]   ;;  %s1223_s5 = inlined_call_operand.vmem [shape: f32[2,64,1], index: 5, kind: output, shape index: {2}]  }
   0x1 LB: > { %s759_s19 = sadd.s32 4294967295, %s948_s18   ;;  %p763_p0 = scmp.ge.s32.totalorder %s948_s18, 1  ;;  %s948_s18 = sphi %s980_s18, %s16_s18  }
   0x2   : > { %p192_p1 = scmp.lt.s32.totalorder %s948_s18, 3 }
   0x4   : > { %p193_p2 = pnand %p763_p0, %p192_p1 }
   0x5   : > { %v298_v0 = vld [vmem:[%s1219_s1 + $0x80] sm:$0xff] (!%p193_p2)  ;;  %v299_v1 = vld [vmem:[%s1219_s1 + $0x88] sm:$0xff] (!%p193_p2)  ;;  %p230_p3 = scmp.lt.s32.totalorder (!%p193_p2), %s759_s19, 1  ;;  %v300_v5 = vld [vmem:[%s1219_s1 + $0x90] sm:$0xff] (!%p193_p2)  ;;  %vm427_vm0 = vcmask (!%p193_p2), 523264   ;;  %vm589_vm1 = vcmask (!%p193_p2), 7168  }
   0x6   : > { %196 = sbr.rel (%p193_p2) target bundleno = 675 (0x2a3), region = 32  ;;  %v282_v2 = vld [vmem:[%s1219_s1] sm:$0xff] (!%p193_p2)  ;;  %v886_v3 = vpack.c.bf16 (!%p193_p2), %v299_v1, %v298_v0  ;;  %v283_v4 = vld [vmem:[%s1219_s1 + $0x8] sm:$0xff] (!%p193_p2)  ;;  %v301_v6 = vld [vmem:[%s1219_s1 + $0x98] sm:$0xff] (!%p193_p2) }
   0x7   : > { %v888_v7 = vpack.c.bf16 (!%p193_p2), %v283_v4, %v282_v2  ;;  %v890_v8 = vpack.c.bf16 (!%p193_p2), %v301_v6, %v300_v5  ;;  %v284_v9 = vld [vmem:[%s1219_s1 + $0x10] sm:$0xff] (!%p193_p2)  ;;  %v285_v10 = vld [vmem:[%s1219_s1 + $0x18] sm:$0xff] (!%p193_p2)  ;;  %v302_v11 = vld [vmem:[%s1219_s1 + $0xa0] sm:$0xff] (!%p193_p2) }
   0x8   : > { %887 = vmatprep.subr.bf16.mxu0 (!%p193_p2), %v886_v3  ;;  %v303_v12 = vld [vmem:[%s1219_s1 + $0xa8] sm:$0xff] (!%p193_p2)  ;;  %v892_v13 = vpack.c.bf16 (!%p193_p2), %v285_v10, %v284_v9  ;;  %v286_v15 = vld [vmem:[%s1219_s1 + $0x20] sm:$0xff] (!%p193_p2)  ;;  %v304_v17 = vld [vmem:[%s1219_s1 + $0xb0] sm:$0xff] (!%p193_p2) }
   0x9   : > { %889 = vmatpush3.bf16.msra.mxu0 (!%p193_p2), %v888_v7  ;;  %v894_v14 = vpack.c.bf16 (!%p193_p2), %v303_v12, %v302_v11  ;;  %v287_v16 = vld [vmem:[%s1219_s1 + $0x28] sm:$0xff] (!%p193_p2)  ;;  %v305_v18 = vld [vmem:[%s1219_s1 + $0xb8] sm:$0xff] (!%p193_p2)  ;;  %v288_v21 = vld [vmem:[%s1219_s1 + $0x30] sm:$0xff] (!%p193_p2) }
   0xa   : > { %891 = vmatprep.subr.bf16.mxu0 (!%p193_p2), %v890_v8  ;;  %v896_v19 = vpack.c.bf16 (!%p193_p2), %v287_v16, %v286_v15  ;;  %v898_v20 = vpack.c.bf16 (!%p193_p2), %v305_v18, %v304_v17  ;;  %v289_v22 = vld [vmem:[%s1219_s1 + $0x38] sm:$0xff] (!%p193_p2)  ;;  %v306_v23 = vld [vmem:[%s1219_s1 + $0xc0] sm:$0xff] (!%p193_p2)  ;;  %v307_v24 = vld [vmem:[%s1219_s1 + $0xc8] sm:$0xff] (!%p193_p2) }
   0xb   : > { %v900_v27 = vpack.c.bf16 (!%p193_p2), %v289_v22, %v288_v21  ;;  %v902_v28 = vpack.c.bf16 (!%p193_p2), %v307_v24, %v306_v23  ;;  %v290_v29 = vld [vmem:[%s1219_s1 + $0x40] sm:$0xff] (!%p193_p2)  ;;  %v291_v30 = vld [vmem:[%s1219_s1 + $0x48] sm:$0xff] (!%p193_p2)  ;;  %v308_v31 = vld [vmem:[%s1219_s1 + $0xd0] sm:$0xff] (!%p193_p2) }
   0xc   : > { %v309_v32 = vld [vmem:[%s1219_s1 + $0xd8] sm:$0xff] (!%p193_p2)  ;;  %v904_v33 = vpack.c.bf16 (!%p193_p2), %v291_v30, %v290_v29  ;;  %v292_v35 = vld [vmem:[%s1219_s1 + $0x50] sm:$0xff] (!%p193_p2)  ;;  %v310_v37 = vld [vmem:[%s1219_s1 + $0xe0] sm:$0xff] (!%p193_p2) }
   0xd   : > { %s1225_s19 = smov (!%p230_p3, %s759_s19), 1  ;;  %893 = vmatpush3.bf16.msra.mxu0 %v892_v13  ;;  %v906_v34 = vpack.c.bf16 %v309_v32, %v308_v31  ;;  %v293_v36 = vld [vmem:[%s1219_s1 + $0x58] sm:$0xff]  ;;  %v311_v38 = vld [vmem:[%s1219_s1 + $0xe8] sm:$0xff]  ;;  %v294_v41 = vld [vmem:[%s1219_s1 + $0x60] sm:$0xff] }
   0xe   : > { %s782_s15 = sshll.u32 %s1225_s19, 7  ;;  %895 = vmatprep.subr.bf16.mxu0 %v894_v14  ;;  %v908_v39 = vpack.c.bf16 %v293_v36, %v292_v35  ;;  %v910_v40 = vpack.c.bf16 %v311_v38, %v310_v37  ;;  %v295_v42 = vld [vmem:[%s1219_s1 + $0x68] sm:$0xff]  ;;  %v312_v43 = vld [vmem:[%s1219_s1 + $0xf0] sm:$0xff]  ;;  %v313_v44 = vld [vmem:[%s1219_s1 + $0xf8] sm:$0xff]  ;;  %s1141_s11 = sshll.u32 %s1225_s19, 6 }
   0xf   : > { %s1036_s28 = scalar_lea.vmem %s1218_s0, %s782_s15  ;;  %v912_v45 = vpack.c.bf16 %v295_v42, %v294_v41  ;;  %v914_v46 = vpack.c.bf16 %v313_v44, %v312_v43  ;;  %v296_v47 = vld [vmem:[%s1219_s1 + $0x70] sm:$0xff]  ;;  %v297_v48 = vld [vmem:[%s1219_s1 + $0x78] sm:$0xff]  ;;  %v419_v16 = vld [vmem:[%s1220_s2] sm:$0xff]  ;;  %s1147_s14 = scalar_lea.vmem %s1221_s3, %s1141_s11 }
  0x10   : > { %v251_v25 = vld [vmem:[%s1036_s28 + $0x8] sm:$0xff]  ;;  %v916_v49 = vpack.c.bf16 %v297_v48, %v296_v47  ;;  %v250_v50 = vld [vmem:[%s1036_s28] sm:$0xff]  ;;  %v253_v51 = vld [vmem:[%s1036_s28 + $0x18] sm:$0xff]  ;;  %874 = vmatprep.mubr.msk.f32.mxu1 %vm427_vm0, %v419_v16  ;;  %s244_s16 = scalar_lea.vmem %s1222_s4, %s1141_s11  ;;  %s1189_s21 = scalar_lea.vmem %s1223_s5, %s1141_s11 }
  0x11   : > { %v267_v26 = vmax.f32 %v251_v25, 0.0  ;;  %897 = vmatpush3.bf16.msra.mxu0 %v896_v19  ;;  %v266_v52 = vmax.f32 %v250_v50, 0.0  ;;  %v269_v53 = vmax.f32 %v253_v51, 0.0  ;;  %v252_v54 = vld [vmem:[%s1036_s28 + $0x10] sm:$0xff]  ;;  %v255_v55 = vld [vmem:[%s1036_s28 + $0x28] sm:$0xff]  ;;  %v254_v58 = vld [vmem:[%s1036_s28 + $0x20] sm:$0xff] }
  0x12   : > { %899 = vmatprep.subr.bf16.mxu0 %v898_v20  ;;  %v268_v56 = vmax.f32 %v252_v54, 0.0  ;;  %v271_v57 = vmax.f32 %v255_v55, 0.0  ;;  %v257_v59 = vld [vmem:[%s1036_s28 + $0x38] sm:$0xff]  ;;  %v270_v60 = vmax.f32 %v254_v58, 0.0  ;;  %v256_v62 = vld [vmem:[%s1036_s28 + $0x30] sm:$0xff]  ;;  %v259_v63 = vld [vmem:[%s1036_s28 + $0x48] sm:$0xff] }
  0x13   : > { %378 = vmatprep.mubr.f32.mxu0 %v267_v26  ;;  %v273_v61 = vmax.f32 %v257_v59, 0.0  ;;  %v272_v0 = vmax.f32 %v256_v62, 0.0  ;;  %v275_v1 = vmax.f32 %v259_v63, 0.0  ;;  %v258_v2 = vld [vmem:[%s1036_s28 + $0x40] sm:$0xff]  ;;  %v261_v3 = vld [vmem:[%s1036_s28 + $0x58] sm:$0xff]  ;;  %v260_v6 = vld [vmem:[%s1036_s28 + $0x50] sm:$0xff] }
  0x14   : > { %v274_v4 = vmax.f32 %v258_v2, 0.0  ;;  %v277_v5 = vmax.f32 %v261_v3, 0.0  ;;  %v263_v7 = vld [vmem:[%s1036_s28 + $0x68] sm:$0xff]  ;;  %v276_v8 = vmax.f32 %v260_v6, 0.0  ;;  %v262_v10 = vld [vmem:[%s1036_s28 + $0x60] sm:$0xff]  ;;  %v265_v11 = vld [vmem:[%s1036_s28 + $0x78] sm:$0xff] }
  0x15   : > { %901 = vmatpush3.bf16.msra.mxu0 %v900_v27  ;;  %v279_v9 = vmax.f32 %v263_v7, 0.0  ;;  %v278_v12 = vmax.f32 %v262_v10, 0.0  ;;  %v281_v13 = vmax.f32 %v265_v11, 0.0  ;;  %v264_v14 = vld [vmem:[%s1036_s28 + $0x70] sm:$0xff]  ;;  %v422_v47 = vld [vmem:[%s1220_s2 + $0x18] sm:$0xff]  ;;  %v423_v48 = vld [vmem:[%s1220_s2 + $0x20] sm:$0xff] }
  0x16   : > { %903 = vmatprep.subr.bf16.mxu0 %v902_v28  ;;  %v280_v15 = vmax.f32 %v264_v14, 0.0  ;;  %v425_v50 = vld [vmem:[%s1220_s2 + $0x30] sm:$0xff]  ;;  %v426_v51 = vld [vmem:[%s1220_s2 + $0x38] sm:$0xff] }
  0x19   : > { %905 = vmatpush3.bf16.msra.mxu0 %v904_v33 }
  0x1a   : > { %907 = vmatprep.subr.bf16.mxu0 %v906_v34 }
  0x1d   : > { %909 = vmatpush3.bf16.msra.mxu0 %v908_v39 }
  0x1e   : > { %911 = vmatprep.subr.bf16.mxu0 %v910_v40 }
  0x21   : > { %913 = vmatpush3.bf16.msra.mxu0 %v912_v45  ;;  %v420_v45 = vld [vmem:[%s1220_s2 + $0x8] sm:$0xff] }
  0x22   : > { %915 = vmatprep.subr.bf16.mxu0 %v914_v46  ;;  %v421_v46 = vld [vmem:[%s1220_s2 + $0x10] sm:$0xff] }
  0x25   : > { %917 = vmatpush3.bf16.msra.mxu0 %v916_v49  ;;  %v424_v49 = vld [vmem:[%s1220_s2 + $0x28] sm:$0xff] }
  0x28   : > { %379 = vmatmul.mubr.f32.vlgmr.msra.gmra.mrb[0].mxu0 %v266_v52 }
  0x29   : > { %383 = vmatprep.mubr.f32.mxu0 %v269_v53 }
  0x2c   : > { %384 = vmatmul.mubr.f32.gmra.mrb[2].mxu0 %v268_v56 }
  0x2d   : > { %388 = vmatprep.mubr.f32.mxu0 %v271_v57 }
  0x30   : > { %389 = vmatmul.mubr.f32.gmra.mrb[4].mxu0 %v270_v60 }
  0x31   : > { %393 = vmatprep.mubr.f32.mxu0 %v273_v61 }
  0x34   : > { %394 = vmatmul.mubr.f32.gmra.mrb[6].mxu0 %v272_v0 }
  0x35   : > { %398 = vmatprep.mubr.f32.mxu0 %v275_v1 }
  0x38   : > { %399 = vmatmul.mubr.f32.gmra.mrb[8].mxu0 %v274_v4 }
  0x39   : > { %403 = vmatprep.mubr.f32.mxu0 %v277_v5 }
  0x3c   : > { %404 = vmatmul.mubr.f32.gmra.mrb[10].mxu0 %v276_v8 }
  0x3d   : > { %408 = vmatprep.mubr.f32.mxu0 %v279_v9 }
  0x40   : > { %409 = vmatmul.mubr.f32.gmra.mrb[12].mxu0 %v278_v12 }
  0x41   : > { %413 = vmatprep.mubr.f32.mxu0 %v281_v13 }
  0x44   : > { %414 = vmatmul.mubr.f32.gmra.mrb[14].mxu0 %v280_v15 }
  0xfb   : > { %v818_v17 = vpop.f32.mrb[0].mxu0 }
  0xfc   : > { %v819_v18 = vpop.f32.mrb[1].mxu0 }
  0xfd   : > { %v820_v19 = vadd.f32 %v819_v18, %v818_v17 }
  0xff   : > { %v821_v20 = vpop.f32.mrb[2].mxu0 }
 0x100   : > { %v822_v21 = vpop.f32.mrb[3].mxu0 }
 0x101   : > { %v823_v22 = vadd.f32 %v822_v21, %v821_v20 }
 0x103   : > { %v824_v23 = vpop.f32.mrb[4].mxu0  ;;  %v918_v24 = vpack.c.bf16 %v823_v22, %v820_v19 }
 0x104   : > { %v825_v25 = vpop.f32.mrb[5].mxu0 }
 0x105   : > { %v826_v26 = vadd.f32 %v825_v25, %v824_v23  ;;  %919 = vmatprep.subr.bf16.mxu1 %v918_v24 }
 0x106   : > { %921 = vmatpush3.bf16.msra.mxu1 %v918_v24 }
 0x107   : > { %v827_v27 = vpop.f32.mrb[6].mxu0 }
 0x108   : > { %v828_v28 = vpop.f32.mrb[7].mxu0 }
 0x109   : > { %v829_v29 = vadd.f32 %v828_v28, %v827_v27 }
 0x10b   : > { %v922_v30 = vpack.c.bf16 %v829_v29, %v826_v26  ;;  %v830_v31 = vpop.f32.mrb[8].mxu0 }
 0x10c   : > { %v831_v32 = vpop.f32.mrb[9].mxu0 }
 0x10d   : > { %v832_v33 = vadd.f32 %v831_v32, %v830_v31  ;;  %923 = vmatprep.subr.bf16.mxu1 %v922_v30 }
 0x10e   : > { %925 = vmatpush3.bf16.msra.mxu1 %v922_v30 }
 0x10f   : > { %v833_v34 = vpop.f32.mrb[10].mxu0 }
 0x110   : > { %v834_v35 = vpop.f32.mrb[11].mxu0 }
 0x111   : > { %v835_v36 = vadd.f32 %v834_v35, %v833_v34 }
 0x113   : > { %v926_v37 = vpack.c.bf16 %v835_v36, %v832_v33  ;;  %v836_v38 = vpop.f32.mrb[12].mxu0 }
 0x114   : > { %v837_v39 = vpop.f32.mrb[13].mxu0 }
 0x115   : > { %v838_v40 = vadd.f32 %v837_v39, %v836_v38  ;;  %927 = vmatprep.subr.bf16.mxu1 %v926_v37 }
 0x116   : > { %929 = vmatpush3.bf16.msra.mxu1 %v926_v37 }
 0x117   : > { %v839_v41 = vpop.f32.mrb[14].mxu0 }
 0x118   : > { %v840_v42 = vpop.f32.mrb[15].mxu0 }
 0x119   : > { %v841_v43 = vadd.f32 %v840_v42, %v839_v41 }
 0x11b   : > { %v930_v44 = vpack.c.bf16 %v841_v43, %v838_v40 }
 0x11d   : > { %931 = vmatprep.subr.bf16.mxu1 %v930_v44 }
 0x11e   : > { %933 = vmatpush3.bf16.msra.mxu1 %v930_v44 }
 0x121   : > { %875 = vmatmul.mubr.msk.f32.vlgmr.msra.gmra.mrb[0].mxu1 %vm427_vm0, %v420_v45 }
 0x122   : > { %877 = vmatprep.mubr.msk.f32.mxu1 %vm427_vm0, %v421_v46 }
 0x125   : > { %878 = vmatmul.mubr.msk.f32.gmra.mrb[2].mxu1 %vm427_vm0, %v422_v47 }
 0x126   : > { %880 = vmatprep.mubr.msk.f32.mxu1 %vm427_vm0, %v423_v48 }
 0x129   : > { %881 = vmatmul.mubr.msk.f32.gmra.mrb[4].mxu1 %vm427_vm0, %v424_v49 }
 0x12a   : > { %883 = vmatprep.mubr.msk.f32.mxu1 %vm427_vm0, %v425_v50 }
 0x12d   : > { %884 = vmatmul.mubr.msk.f32.gmra.mrb[6].mxu1 %vm427_vm0, %v426_v51 }
 0x1f4   : > { %v876_v52 = vpop.f32.mrb[0].mxu1 }
 0x1f5   : > { %558 = vst.msk [vmem:[%s1147_s14 + $0x8] sm:$0xff] %vm427_vm0, %v876_v52  ;;  %v518_v53 = vpop.f32.mrb[1].mxu1  ;;  %v568_v54 = vsel %vm427_vm0, %v876_v52, 0.0  ;;  %v599_v55 = vmul.f32 %v876_v52, %v876_v52 }
 0x1f6   : > { %557 = vst.msk [vmem:[%s1147_s14] sm:$0xff] %vm427_vm0, %v518_v53  ;;  %569 = vadd.xlane.f32.xlu0 %v568_v54  ;;  %v565_v58 = vsel %vm427_vm0, %v518_v53, 0.0  ;;  %v598_v61 = vmul.f32 %v518_v53, %v518_v53 }
 0x1f7   : > { %v609_v56 = vsel %vm427_vm0, %v599_v55, 0.0 }
 0x1f8   : > { %610 = vadd.xlane.f32.xlu1 %v609_v56  ;;  %v879_v57 = vpop.f32.mrb[2].mxu1  ;;  %v606_v63 = vsel %vm427_vm0, %v598_v61, 0.0 }
 0x1f9   : > { %560 = vst.msk [vmem:[%s1147_s14 + $0x18] sm:$0xff] %vm427_vm0, %v879_v57  ;;  %v528_v59 = vpop.f32.mrb[3].mxu1  ;;  %v574_v60 = vsel %vm427_vm0, %v879_v57, 0.0  ;;  %v601_v3 = vmul.f32 %v879_v57, %v879_v57 }
 0x1fa   : > { %566 = vadd.xlane.f32.xlu0 %v565_v58  ;;  %559 = vst.msk [vmem:[%s1147_s14 + $0x10] sm:$0xff] %vm427_vm0, %v528_v59  ;;  %v600_v0 = vmul.f32 %v528_v59, %v528_v59  ;;  %v571_v2 = vsel %vm427_vm0, %v528_v59, 0.0 }
 0x1fb   : > { %v615_v7 = vsel %vm427_vm0, %v601_v3, 0.0 }
 0x1fc   : > { %575 = vadd.xlane.f32.xlu1 %v574_v60  ;;  %v882_v62 = vpop.f32.mrb[4].mxu1  ;;  %v612_v5 = vsel %vm427_vm0, %v600_v0, 0.0 }
 0x1fd   : > { %562 = vst.msk [vmem:[%s1147_s14 + $0x28] sm:$0xff] %vm427_vm0, %v882_v62  ;;  %v538_v1 = vpop.f32.mrb[5].mxu1  ;;  %v580_v10 = vsel %vm427_vm0, %v882_v62, 0.0  ;;  %v603_v12 = vmul.f32 %v882_v62, %v882_v62 }
 0x1fe   : > { %607 = vadd.xlane.f32.xlu0 %v606_v63  ;;  %561 = vst.msk [vmem:[%s1147_s14 + $0x20] sm:$0xff] %vm427_vm0, %v538_v1  ;;  %v577_v8 = vsel %vm427_vm0, %v538_v1, 0.0  ;;  %v602_v9 = vmul.f32 %v538_v1, %v538_v1 }
 0x1ff   : > { %v621_v13 = vsel %vm427_vm0, %v603_v12, 0.0 }
 0x200   : > { %572 = vadd.xlane.f32.xlu1 %v571_v2  ;;  %v885_v4 = vpop.f32.mrb[6].mxu1  ;;  %v618_v11 = vsel %vm427_vm0, %v602_v9, 0.0 }
 0x201   : > { %564 = vst.msk [vmem:[%s1147_s14 + $0x38] sm:$0xff] %vm427_vm0, %v885_v4  ;;  %v548_v6 = vpop.f32.mrb[7].mxu1  ;;  %v586_v16 = vsel %vm427_vm0, %v885_v4, 0.0  ;;  %v605_v18 = vmul.f32 %v885_v4, %v885_v4 }
 0x202   : > { %613 = vadd.xlane.f32.xlu0 %v612_v5  ;;  %563 = vst.msk [vmem:[%s1147_s14 + $0x30] sm:$0xff] %vm427_vm0, %v548_v6  ;;  %v604_v14 = vmul.f32 %v548_v6, %v548_v6  ;;  %v583_v15 = vsel %vm427_vm0, %v548_v6, 0.0 }
 0x203   : > { %v627_v19 = vsel %vm427_vm0, %v605_v18, 0.0 }
 0x204   : > { %616 = vadd.xlane.f32.xlu1 %v615_v7  ;;  %v624_v17 = vsel %vm427_vm0, %v604_v14, 0.0 }
 0x206   : > { %578 = vadd.xlane.f32.xlu0 %v577_v8 }
 0x208   : > { %581 = vadd.xlane.f32.xlu1 %v580_v10 }
 0x20a   : > { %619 = vadd.xlane.f32.xlu0 %v618_v11 }
 0x20c   : > { %622 = vadd.xlane.f32.xlu1 %v621_v13 }
 0x20e   : > { %584 = vadd.xlane.f32.xlu0 %v583_v15 }
 0x210   : > { %587 = vadd.xlane.f32.xlu1 %v586_v16 }
 0x212   : > { %625 = vadd.xlane.f32.xlu0 %v624_v17 }
 0x214   : > { %628 = vadd.xlane.f32.xlu1 %v627_v19 }
 0x283   : > { %v570_v20 = vpop.xlane.xlu0 %569 }
 0x284   : > { %591 = vst.msk [vmem:[%s244_s16 + $0x8] sm:$0xff] %vm589_vm1, %v570_v20 }
 0x285   : > { %v611_v21 = vpop.xlane.xlu1 %610 }
 0x286   : > { %631 = vst.msk [vmem:[%s1189_s21 + $0x8] sm:$0xff] %vm589_vm1, %v611_v21 }
 0x287   : > { %v567_v22 = vpop.xlane.xlu0 %566 }
 0x288   : > { %590 = vst.msk [vmem:[%s244_s16] sm:$0xff] %vm589_vm1, %v567_v22 }
 0x289   : > { %v576_v23 = vpop.xlane.xlu1 %575 }
 0x28a   : > { %593 = vst.msk [vmem:[%s244_s16 + $0x18] sm:$0xff] %vm589_vm1, %v576_v23 }
 0x28b   : > { %v608_v24 = vpop.xlane.xlu0 %607 }
 0x28c   : > { %630 = vst.msk [vmem:[%s1189_s21] sm:$0xff] %vm589_vm1, %v608_v24 }
 0x28d   : > { %v573_v25 = vpop.xlane.xlu1 %572 }
 0x28e   : > { %592 = vst.msk [vmem:[%s244_s16 + $0x10] sm:$0xff] %vm589_vm1, %v573_v25 }
 0x28f   : > { %v614_v26 = vpop.xlane.xlu0 %613 }
 0x290   : > { %632 = vst.msk [vmem:[%s1189_s21 + $0x10] sm:$0xff] %vm589_vm1, %v614_v26 }
 0x291   : > { %v617_v27 = vpop.xlane.xlu1 %616 }
 0x292   : > { %633 = vst.msk [vmem:[%s1189_s21 + $0x18] sm:$0xff] %vm589_vm1, %v617_v27 }
 0x293   : > { %v579_v28 = vpop.xlane.xlu0 %578 }
 0x294   : > { %594 = vst.msk [vmem:[%s244_s16 + $0x20] sm:$0xff] %vm589_vm1, %v579_v28 }
 0x295   : > { %v582_v29 = vpop.xlane.xlu1 %581 }
 0x296   : > { %595 = vst.msk [vmem:[%s244_s16 + $0x28] sm:$0xff] %vm589_vm1, %v582_v29 }
 0x297   : > { %v620_v30 = vpop.xlane.xlu0 %619 }
 0x298   : > { %634 = vst.msk [vmem:[%s1189_s21 + $0x20] sm:$0xff] %vm589_vm1, %v620_v30 }
 0x299   : > { %v623_v31 = vpop.xlane.xlu1 %622 }
 0x29a   : > { %635 = vst.msk [vmem:[%s1189_s21 + $0x28] sm:$0xff] %vm589_vm1, %v623_v31 }
 0x29b   : > { %v585_v32 = vpop.xlane.xlu0 %584 }
 0x29c   : > { %596 = vst.msk [vmem:[%s244_s16 + $0x30] sm:$0xff] %vm589_vm1, %v585_v32 }
 0x29d   : > { %v588_v33 = vpop.xlane.xlu1 %587 }
 0x29e   : > { %597 = vst.msk [vmem:[%s244_s16 + $0x38] sm:$0xff] %vm589_vm1, %v588_v33 }
 0x29f   : > { %v626_v34 = vpop.xlane.xlu0 %625 }
 0x2a0   : > { %636 = vst.msk [vmem:[%s1189_s21 + $0x30] sm:$0xff] %vm589_vm1, %v626_v34 }
 0x2a1   : > { %v629_v35 = vpop.xlane.xlu1 %628 }
 0x2a2   : > { %637 = vst.msk [vmem:[%s1189_s21 + $0x38] sm:$0xff] %vm589_vm1, %v629_v35 }
 0x2a3 PF: > { %s16_s18 = sadd.s32 1, %s948_s18  }
 0x2a4   : > { %p13_p4 = scmp.ge.s32.totalorder %s16_s18, 4  }
 0x2a6   :  { %15 = sbr.rel (!%p13_p4) target bundleno = 1 (0x1), region = 86 }

// kernel: customnet_forward.3
= control target key start
LH: loop header
LB: loop body
LE: loop exit
PB: predicated region body
PF: predicated region fallthrough
CT: control target
= control target key end

     0   :  { %s408_s12 = smov 0   ;;  %s495_s0 = inlined_call_operand.vmem [shape: f32[2,64,64], index: 0, kind: input, shape index: {}]   ;;  %s496_s1 = inlined_call_operand.vmem [shape: f32[64,1], index: 1, kind: input, shape index: {}]   ;;  %s497_s2 = inlined_call_operand.vmem [shape: f32[64,1], index: 2, kind: input, shape index: {}]   ;;  %s498_s3 = inlined_call_operand.vmem [shape: f32[2,64,64], index: 3, kind: output, shape index: {}]  }
   0x1 LB: > { %s355_s13 = sadd.s32 4294967295, %s385_s12   ;;  %p359_p0 = scmp.ge.s32.totalorder %s385_s12, 1  ;;  %s385_s12 = sphi %s408_s12, %s13_s12  }
   0x2   : > { %p137_p1 = scmp.lt.s32.totalorder %s385_s12, 3 }
   0x4   : > { %p138_p2 = pnand %p359_p0, %p137_p1 }
   0x5   : > { %v181_v0 = vld [vmem:[%s496_s1 + $0x10] sm:$0xff] (!%p138_p2)  ;;  %v179_v1 = vld [vmem:[%s496_s1] sm:$0xff] (!%p138_p2)  ;;  %v387_v2 = vmov (!%p138_p2), 0   ;;  %v182_v3 = vld [vmem:[%s496_s1 + $0x18] sm:$0xff] (!%p138_p2)  ;;  %p161_p3 = scmp.lt.s32.totalorder (!%p138_p2), %s355_s13, 1  ;;  %vm291_vm0 = vcmask (!%p138_p2), 523264  }
   0x6   : > { %141 = sbr.rel (%p138_p2) target bundleno = 166 (0xa6), region = 32  ;;  %378 = vset.pattern.permute.xlu1 (!%p138_p2), %v387_v2  ;;  %377 = vset.pattern.permute.xlu0 (!%p138_p2), %v387_v2  ;;  %v180_v4 = vld [vmem:[%s496_s1 + $0x8] sm:$0xff] (!%p138_p2)  ;;  %v183_v6 = vld [vmem:[%s496_s1 + $0x20] sm:$0xff] (!%p138_p2)  ;;  %v186_v7 = vld [vmem:[%s496_s1 + $0x38] sm:$0xff] (!%p138_p2) }
   0x7   : > { %199 = vperm.xlu1 (!%p138_p2), %378, %v181_v0   ;;  %189 = vperm.xlu0 (!%p138_p2), %377, %v179_v1   ;;  %v184_v5 = vld [vmem:[%s496_s1 + $0x28] sm:$0xff] (!%p138_p2)  ;;  %v185_v8 = vld [vmem:[%s496_s1 + $0x30] sm:$0xff] (!%p138_p2)  ;;  %v235_v10 = vld [vmem:[%s497_s2] sm:$0xff] (!%p138_p2) }
   0x8   : > { %v236_v9 = vld [vmem:[%s497_s2 + $0x8] sm:$0xff] (!%p138_p2)  ;;  %v238_v11 = vld [vmem:[%s497_s2 + $0x18] sm:$0xff] (!%p138_p2)  ;;  %v237_v12 = vld [vmem:[%s497_s2 + $0x10] sm:$0xff] (!%p138_p2) }
   0x9   : > { %v240_v13 = vld [vmem:[%s497_s2 + $0x28] sm:$0xff] (!%p138_p2)  ;;  %v239_v14 = vld [vmem:[%s497_s2 + $0x20] sm:$0xff] (!%p138_p2)  ;;  %v242_v15 = vld [vmem:[%s497_s2 + $0x38] sm:$0xff] (!%p138_p2) }
   0xa   : > { %v241_v16 = vld [vmem:[%s497_s2 + $0x30] sm:$0xff] (!%p138_p2) }
   0xb   : > { %204 = vperm.xlu1 (!%p138_p2), %378, %v182_v3   ;;  %194 = vperm.xlu0 (!%p138_p2), %377, %v180_v4  }
   0xd   : > { %s500_s13 = smov (!%p161_p3, %s355_s13), 1 }
   0xe   : > { %s366_s21 = sshll.u32 %s500_s13, 6 }
   0xf   : > { %214 = vperm.xlu1 %378, %v184_v5   ;;  %209 = vperm.xlu0 %377, %v183_v6   ;;  %s165_s24 = scalar_lea.vmem %s495_s0, %s366_s21  ;;  %s474_s27 = scalar_lea.vmem %s498_s3, %s366_s21 }
  0x10   : > { %v171_v23 = vld [vmem:[%s165_s24] sm:$0xff]  ;;  %v172_v24 = vld [vmem:[%s165_s24 + $0x8] sm:$0xff]  ;;  %v173_v29 = vld [vmem:[%s165_s24 + $0x10] sm:$0xff] }
  0x11   : > { %v174_v30 = vld [vmem:[%s165_s24 + $0x18] sm:$0xff]  ;;  %v176_v37 = vld [vmem:[%s165_s24 + $0x28] sm:$0xff]  ;;  %v175_v38 = vld [vmem:[%s165_s24 + $0x20] sm:$0xff] }
  0x12   : > { %v178_v45 = vld [vmem:[%s165_s24 + $0x38] sm:$0xff]  ;;  %v177_v46 = vld [vmem:[%s165_s24 + $0x30] sm:$0xff] }
  0x13   : > { %224 = vperm.xlu1 %378, %v186_v7   ;;  %219 = vperm.xlu0 %377, %v185_v8  }
  0x17   : > { %250 = vperm.xlu1 %378, %v236_v9   ;;  %245 = vperm.xlu0 %377, %v235_v10  }
  0x1b   : > { %260 = vperm.xlu1 %378, %v238_v11   ;;  %255 = vperm.xlu0 %377, %v237_v12  }
  0x1f   : > { %270 = vperm.xlu1 %378, %v240_v13   ;;  %265 = vperm.xlu0 %377, %v239_v14  }
  0x23   : > { %280 = vperm.xlu1 %378, %v242_v15   ;;  %275 = vperm.xlu0 %377, %v241_v16  }
  0x86   : > { %v200_v17 = vpop.permute.xlu1 %199  ;;  %v190_v18 = vpop.permute.xlu0 %189 }
  0x87   : > { %v227_v27 = vmul.f32 %v190_v18, %v171_v23  ;;  %v229_v35 = vmul.f32 %v200_v17, %v173_v29 }
  0x8a   : > { %v205_v19 = vpop.permute.xlu1 %204  ;;  %v195_v20 = vpop.permute.xlu0 %194 }
  0x8b   : > { %v228_v28 = vmul.f32 %v195_v20, %v172_v24  ;;  %v230_v36 = vmul.f32 %v205_v19, %v174_v30 }
  0x8e   : > { %v215_v21 = vpop.permute.xlu1 %214  ;;  %v210_v22 = vpop.permute.xlu0 %209 }
  0x8f   : > { %v232_v43 = vmul.f32 %v215_v21, %v176_v37  ;;  %v231_v44 = vmul.f32 %v210_v22, %v175_v38 }
  0x92   : > { %v225_v25 = vpop.permute.xlu1 %224  ;;  %v220_v26 = vpop.permute.xlu0 %219 }
  0x93   : > { %v234_v51 = vmul.f32 %v225_v25, %v178_v45  ;;  %v233_v52 = vmul.f32 %v220_v26, %v177_v46 }
  0x96   : > { %v251_v31 = vpop.permute.xlu1 %250  ;;  %v246_v32 = vpop.permute.xlu0 %245 }
  0x97   : > { %v284_v33 = vadd.f32 %v251_v31, %v228_v28  ;;  %v283_v34 = vadd.f32 %v246_v32, %v227_v27 }
  0x99   : > { %293 = vst.msk [vmem:[%s474_s27 + $0x8] sm:$0xff] %vm291_vm0, %v284_v33  ;;  %292 = vst.msk [vmem:[%s474_s27] sm:$0xff] %vm291_vm0, %v283_v34 }
  0x9a   : > { %v261_v39 = vpop.permute.xlu1 %260  ;;  %v256_v40 = vpop.permute.xlu0 %255 }
  0x9b   : > { %v286_v41 = vadd.f32 %v261_v39, %v230_v36  ;;  %v285_v42 = vadd.f32 %v256_v40, %v229_v35 }
  0x9d   : > { %295 = vst.msk [vmem:[%s474_s27 + $0x18] sm:$0xff] %vm291_vm0, %v286_v41  ;;  %294 = vst.msk [vmem:[%s474_s27 + $0x10] sm:$0xff] %vm291_vm0, %v285_v42 }
  0x9e   : > { %v271_v47 = vpop.permute.xlu1 %270  ;;  %v266_v48 = vpop.permute.xlu0 %265 }
  0x9f   : > { %v288_v49 = vadd.f32 %v271_v47, %v232_v43  ;;  %v287_v50 = vadd.f32 %v266_v48, %v231_v44 }
  0xa1   : > { %297 = vst.msk [vmem:[%s474_s27 + $0x28] sm:$0xff] %vm291_vm0, %v288_v49  ;;  %296 = vst.msk [vmem:[%s474_s27 + $0x20] sm:$0xff] %vm291_vm0, %v287_v50 }
  0xa2   : > { %v281_v53 = vpop.permute.xlu1 %280  ;;  %v276_v54 = vpop.permute.xlu0 %275 }
  0xa3   : > { %v290_v55 = vadd.f32 %v281_v53, %v234_v51  ;;  %v289_v56 = vadd.f32 %v276_v54, %v233_v52 }
  0xa5   : > { %299 = vst.msk [vmem:[%s474_s27 + $0x38] sm:$0xff] %vm291_vm0, %v290_v55  ;;  %298 = vst.msk [vmem:[%s474_s27 + $0x30] sm:$0xff] %vm291_vm0, %v289_v56 }
  0xa6 PF: > { %s13_s12 = sadd.s32 1, %s385_s12  }
  0xa7   : > { %p10_p4 = scmp.ge.s32.totalorder %s13_s12, 4  }
  0xa9   :  { %12 = sbr.rel (!%p10_p4) target bundleno = 1 (0x1), region = 62 }

</bundles_post_ra>
